<compile_context>
chip_gen: v6e
topology: v6e:2x2x1
jax: 0.10.0
libtpu: 0.0.40
codegen_flags: <defaults>
</compile_context>

<pallas_src>
import numpy as np
import jax
import jax.numpy as jnp
from jax.experimental import pallas as pl
from jax.experimental.pallas import tpu as pltpu

N_COLORS = 10
LANE = 128


# ----------------------- deterministic "buffer" setup -----------------------
def gen_color_np(colors, n=N_COLORS):
    """Numpy port of gen_color() for the simple (non-'RB') path."""
    colors = np.asarray(colors, dtype=np.float64)

    def crange(c1, c2, insert_n):
        clist = [np.linspace(c1[i], c2[i], insert_n) for i in range(3)]
        return np.vstack(clist).transpose()

    c = len(colors)
    ln = (n * 10 - 1) // (c - 1) + 1
    linear_color = []
    for i in range(c - 1):
        li = crange(colors[i], colors[i + 1], ln)
        linear_color.append(li[1:] if i else li)
    linear_color = np.concatenate(linear_color, axis=0)
    index = np.linspace(0, len(linear_color) - 1, n).astype(int)
    return linear_color[index]  # (n, 3)


def make_color_maps():
    u_colors = np.array([[0, 255, 0], [0, 0, 255]]) / 255.0   # PlotHeatMap('U')
    v_colors = np.array([[0, 255, 0], [255, 0, 0]]) / 255.0   # PlotHeatMap('V')
    cmap_u = gen_color_np(u_colors).T.astype(np.float32)      # (3, 10)
    cmap_v = gen_color_np(v_colors).T.astype(np.float32)      # (3, 10)
    return cmap_u, cmap_v


def _hinge_coeffs(cmap, snap_eps=1e-6):
    """Piecewise-linear -> hinge basis: c(x) = c0 + d0*x + sum_k dd_k*relu(x-(k+1)).

    Coefficients with magnitude < snap_eps are snapped to exactly 0.0 so the
    trace-time `!= 0.0` skips fire: the two-color U/V colormaps are linear
    ramps and all dd_k are pure np.linspace/float32 resampling noise (~1e-7),
    so each channel degenerates to c0 + d0*x (max deviation ~1e-6 vs. the
    exact lookup, well inside the 1e-5 check below)."""
    cmap = np.asarray(cmap, dtype=np.float32)                 # (3, 10)
    d = (cmap[:, 1:] - cmap[:, :-1]).astype(np.float32)       # (3, 9) segment slopes
    dd = (d[:, 1:] - d[:, :-1]).astype(np.float32)            # (3, 8) slope deltas
    c0 = cmap[:, 0].astype(np.float32)                        # (3,)
    d0 = d[:, 0].astype(np.float32)                           # (3,)
    c0 = np.where(np.abs(c0) < snap_eps, 0.0, c0).astype(np.float32)
    d0 = np.where(np.abs(d0) < snap_eps, 0.0, d0).astype(np.float32)
    dd = np.where(np.abs(dd) < snap_eps, 0.0, dd).astype(np.float32)
    return c0, d0, dd


# --------------------------------- kernel -----------------------------------
def make_plot_yuv_kernel(cmap_u, cmap_v):
    # Colormaps are tiny deterministic module buffers -> bake as constants.
    coeffs_u = _hinge_coeffs(cmap_u)
    coeffs_v = _hinge_coeffs(cmap_v)

    def heat_bases(ch_f32, coeffs):
        """Shared lookup position + (only the needed) hinge bases for a panel."""
        c0, d0, dd = coeffs
        needs_x = bool(np.any(d0 != 0.0)) or bool(np.any(dd != 0.0))
        x = None
        if needs_x:
            x = jnp.clip((1.0 - ch_f32) * float(N_COLORS - 1),
                         0.0, float(N_COLORS - 1))
        relus = {}
        for k in range(N_COLORS - 2):
            if bool(np.any(dd[:, k] != 0.0)):       # skipped entirely after snapping
                relus[k] = jnp.maximum(x - float(k + 1), 0.0)
        return x, relus

    def heat_channel(ch_f32, x, relus, coeffs, c):
        """Evaluate colormap channel c; zero coefficients skipped at trace time."""
        c0, d0, dd = coeffs
        val = None
        if float(d0[c]) != 0.0:
            val = float(d0[c]) * x
        for k in range(N_COLORS - 2):
            coef = float(dd[c, k])
            if coef != 0.0:
                t = coef * relus[k]
                val = t if val is None else val + t
        if val is None:                              # constant channel (e.g. R of U)
            return jnp.full_like(ch_f32, float(c0[c]))
        if float(c0[c]) != 0.0:
            val = val + float(c0[c])
        return val

    def kernel(x_ref, o_ref):
        # x_ref block: (1, 3, TH, W); o_ref block: (1, 3, TH, 3W); W % 128 == 0.
        W = x_ref.shape[3]

        # ---- Y panel: repeat across the 3 RGB channels (stores, no concat) ---
        y = x_ref[0, 0, :, :].astype(o_ref.dtype)
        for c in range(3):
            o_ref[0, c, :, 0:W] = y

        # ---- U heatmap panel (computed & stored before V: smaller live set) -
        u = x_ref[0, 1, :, :].astype(jnp.float32)
        xu, relus_u = heat_bases(u, coeffs_u)
        for c in range(3):
            val = heat_channel(u, xu, relus_u, coeffs_u, c)
            o_ref[0, c, :, W:2 * W] = val.astype(o_ref.dtype)

        # ---- V heatmap panel -------------------------------------------------
        v = x_ref[0, 2, :, :].astype(jnp.float32)
        xv, relus_v = heat_bases(v, coeffs_v)
        for c in range(3):
            val = heat_channel(v, xv, relus_v, coeffs_v, c)
            o_ref[0, c, :, 2 * W:3 * W] = val.astype(o_ref.dtype)

    return kernel


# ------------------------- tiling / VMEM budgeting ---------------------------
def _vmem_budget():
    """Generation-aware budget.  Double-buffered in+out blocks cost ~96 B per
    tile pixel (f32: 12 B input + 36 B output, x2 pipeline buffers).
    Big tiles on 128 MiB parts (v5e/v6e), tighter on 64 MiB v7x."""
    try:
        cap = int(pltpu.get_tpu_info().vmem_capacity_bytes)
    except Exception:
        cap = 64 * 1024 * 1024                      # conservative (v7x per-core)
    max_tile_elems = max(8 * 1024, (cap * 3 // 10) // 96)   # ~30% of VMEM on buffers
    vmem_limit = min(cap * 3 // 4, 100 * 1024 * 1024)       # scoped-VMEM limit
    return max_tile_elems, vmem_limit


def _pick_tile_h(N, H, W, max_tile_elems, min_steps=4):
    """Largest multiple-of-8 H-tile under the element cap (full H when H < 8),
    then shrink (best effort, floor 8) until the grid has >= min_steps steps so
    both v7x TensorCores get work and the DMA pipeline overlaps.  The last
    tile may be ragged; the grid uses cdiv."""
    if H < 8:
        return H
    cap_rows = max(8, max_tile_elems // max(W, 1))
    th = min(H, cap_rows)
    th = max(8, (th // 8) * 8)
    while th > 8 and N * ((H + th - 1) // th) < min_steps:
        th = max(8, ((th // 2) // 8) * 8)
    return th


# --------------------------------- wrapper -----------------------------------
def plot_yuv(x, cmap_u, cmap_v):
    """Pallas port of PlotYUV.forward (generic branch): (N,3,H,W) -> (N,3,H,3W)."""
    N, C, H, W = x.shape
    # TODO(synk): the C==6 branch of PlotYUV uses an undefined depth_to_space
    # helper; only the generic branch (Y has 1 channel, C==3) is implemented.
    assert C == 3, "this Pallas port implements the C==3 (Y,U,V) branch"

    # Lane-dense panel stores: pad W up to a multiple of 128 so the 9 panel
    # stores per block are unmasked vst at lane offsets 0 / Wp / 2*Wp.
    Wp = ((W + LANE - 1) // LANE) * LANE
    xp = x if Wp == W else jnp.pad(x, ((0, 0), (0, 0), (0, 0), (0, Wp - W)))

    max_tile_elems, vmem_limit = _vmem_budget()
    TH = _pick_tile_h(N, H, Wp, max_tile_elems)
    grid = (N, pl.cdiv(H, TH))

    kernel = make_plot_yuv_kernel(cmap_u, cmap_v)
    out_p = pl.pallas_call(
        kernel,
        out_shape=jax.ShapeDtypeStruct((N, 3, H, 3 * Wp), x.dtype),
        grid_spec=pltpu.PrefetchScalarGridSpec(
            num_scalar_prefetch=0,
            grid=grid,
            in_specs=[pl.BlockSpec((1, 3, TH, Wp), lambda n, h: (n, 0, h, 0))],
            out_specs=pl.BlockSpec((1, 3, TH, 3 * Wp), lambda n, h: (n, 0, h, 0)),
        ),
        compiler_params=pltpu.CompilerParams(
            dimension_semantics=("parallel", "parallel"),
            vmem_limit_bytes=int(vmem_limit),
        ),
        cost_estimate=pl.CostEstimate(
            flops=int(20 * N * H * Wp),
            transcendentals=0,
            bytes_accessed=int(48 * N * H * Wp),   # 12 B in + 36 B out per pixel
        ),
    )(xp)

    if Wp == W:
        return out_p
    # Undo the lane padding: pull the valid W columns of each panel back out.
    panels = [out_p[:, :, :, k * Wp:k * Wp + W] for k in range(3)]
    return jnp.concatenate(panels, axis=3)


# ------------------------------- reference ----------------------------------
def _heatmap_ref(ch, cmap):
    """ch: (N, H, W); cmap: (3, 10) -> (N, 3, H, W). Mirrors grid_sample."""
    xp = jnp.clip((1.0 - ch) * (N_COLORS - 1), 0.0, float(N_COLORS - 1))
    i0 = jnp.floor(xp).astype(jnp.int32)
    i1 = jnp.minimum(i0 + 1, N_COLORS - 1)
    w = xp - i0.astype(xp.dtype)
    c0 = cmap[:, i0]  # (3, N, H, W)
    c1 = cmap[:, i1]
    out = c0 * (1.0 - w) + c1 * w
    return jnp.transpose(out, (1, 0, 2, 3))


def plot_yuv_ref(x, cmap_u, cmap_v):
    y = x[:, 0:1]                                       # (N,1,H,W)
    y3 = jnp.concatenate([y, y, y], axis=1)             # repeat(1,3,1,1)
    u = _heatmap_ref(x[:, 1], jnp.asarray(cmap_u))
    v = _heatmap_ref(x[:, 2], jnp.asarray(cmap_v))
    return jnp.concatenate([y3, u, v], axis=3)


# --------------------------------- main --------------------------------------
if __name__ == "__main__":
    key = jax.random.PRNGKey(0)
    N, C, H, W = 2, 3, 16, 16
    x = jax.random.uniform(key, (N, C, H, W), dtype=jnp.float32)

    cmap_u, cmap_v = make_color_maps()

    out = plot_yuv(x, cmap_u, cmap_v)
    out = jax.block_until_ready(out)

    ref = plot_yuv_ref(x, cmap_u, cmap_v)
    assert out.shape == (N, 3, H, 3 * W), out.shape
    np.testing.assert_allclose(np.asarray(out), np.asarray(ref),
                               rtol=1e-5, atol=1e-5)
    print("KERNEL_OK")
</pallas_src>

<mosaic_0001>
module attributes {stable_mosaic.version = 11 : i64} {
  func.func @kernel(%arg0: i32, %arg1: i32, %arg2: memref<1x3x8x128xf32, #tpu.memory_space<vmem>>, %arg3: memref<1x3x8x384xf32, #tpu.memory_space<vmem>>) attributes {dimension_semantics = [#tpu.dimension_semantics<parallel>, #tpu.dimension_semantics<parallel>], iteration_bounds = array<i64: 2, 2>, scalar_prefetch = 0 : i64, scratch_operands = 0 : i64, tpu.core_type = #tpu.core_type<tc>, window_params = [{transform_indices = @transform_0, window_bounds = array<i64: 1, 3, 8, 128>}, {transform_indices = @transform_1, window_bounds = array<i64: 1, 3, 8, 384>}]} {
    %c0 = arith.constant 0 : index
    %c0_0 = arith.constant 0 : index
    %c0_1 = arith.constant 0 : index
    %c0_2 = arith.constant 0 : index
    %0 = vector.load %arg2[%c0, %c0_0, %c0_1, %c0_2] : memref<1x3x8x128xf32, #tpu.memory_space<vmem>>, vector<1x1x8x128xf32>
    %1 = vector.shape_cast %0 : vector<1x1x8x128xf32> to vector<8x128xf32>
    %c0_3 = arith.constant 0 : index
    %c0_4 = arith.constant 0 : index
    %c0_5 = arith.constant 0 : index
    %c0_6 = arith.constant 0 : index
    %2 = vector.load %arg3[%c0_3, %c0_4, %c0_5, %c0_6] : memref<1x3x8x384xf32, #tpu.memory_space<vmem>>, vector<1x1x8x128xf32>
    %3 = vector.shape_cast %2 : vector<1x1x8x128xf32> to vector<8x128xf32>
    %4 = vector.shape_cast %1 : vector<8x128xf32> to vector<1x1x8x128xf32>
    tpu.vector_store %arg3[%c0_3, %c0_4, %c0_5, %c0_6], %4 {strides = array<i32>} : memref<1x3x8x384xf32, #tpu.memory_space<vmem>>, vector<1x1x8x128xf32>,
    %c0_7 = arith.constant 0 : index
    %c1 = arith.constant 1 : index
    %c0_8 = arith.constant 0 : index
    %c0_9 = arith.constant 0 : index
    %5 = vector.load %arg3[%c0_7, %c1, %c0_8, %c0_9] : memref<1x3x8x384xf32, #tpu.memory_space<vmem>>, vector<1x1x8x128xf32>
    %6 = vector.shape_cast %5 : vector<1x1x8x128xf32> to vector<8x128xf32>
    %7 = vector.shape_cast %1 : vector<8x128xf32> to vector<1x1x8x128xf32>
    tpu.vector_store %arg3[%c0_7, %c1, %c0_8, %c0_9], %7 {strides = array<i32>} : memref<1x3x8x384xf32, #tpu.memory_space<vmem>>, vector<1x1x8x128xf32>,
    %c0_10 = arith.constant 0 : index
    %c2 = arith.constant 2 : index
    %c0_11 = arith.constant 0 : index
    %c0_12 = arith.constant 0 : index
    %8 = vector.load %arg3[%c0_10, %c2, %c0_11, %c0_12] : memref<1x3x8x384xf32, #tpu.memory_space<vmem>>, vector<1x1x8x128xf32>
    %9 = vector.shape_cast %8 : vector<1x1x8x128xf32> to vector<8x128xf32>
    %10 = vector.shape_cast %1 : vector<8x128xf32> to vector<1x1x8x128xf32>
    tpu.vector_store %arg3[%c0_10, %c2, %c0_11, %c0_12], %10 {strides = array<i32>} : memref<1x3x8x384xf32, #tpu.memory_space<vmem>>, vector<1x1x8x128xf32>,
    %c0_13 = arith.constant 0 : index
    %c1_14 = arith.constant 1 : index
    %c0_15 = arith.constant 0 : index
    %c0_16 = arith.constant 0 : index
    %11 = vector.load %arg2[%c0_13, %c1_14, %c0_15, %c0_16] : memref<1x3x8x128xf32, #tpu.memory_space<vmem>>, vector<1x1x8x128xf32>
    %12 = vector.shape_cast %11 : vector<1x1x8x128xf32> to vector<8x128xf32>
    %cst = arith.constant 1.000000e+00 : f32
    %13 = vector.broadcast %cst : f32 to vector<8x128xf32>
    %14 = arith.subf %13, %12 : vector<8x128xf32>
    %cst_17 = arith.constant 9.000000e+00 : f32
    %15 = vector.broadcast %cst_17 : f32 to vector<8x128xf32>
    %16 = arith.mulf %14, %15 : vector<8x128xf32>
    %cst_18 = arith.constant 0.000000e+00 : f32
    %cst_19 = arith.constant 9.000000e+00 : f32
    %17 = vector.broadcast %cst_18 : f32 to vector<8x128xf32>
    %18 = arith.maximumf %17, %16 : vector<8x128xf32>
    %19 = vector.broadcast %cst_19 : f32 to vector<8x128xf32>
    %20 = arith.minimumf %19, %18 : vector<8x128xf32>
    %cst_20 = arith.constant 0.000000e+00 : f32
    %21 = vector.broadcast %cst_20 : f32 to vector<8x128xf32>
    %c0_21 = arith.constant 0 : index
    %c0_22 = arith.constant 0 : index
    %c0_23 = arith.constant 0 : index
    %c128 = arith.constant 128 : index
    %22 = vector.load %arg3[%c0_21, %c0_22, %c0_23, %c128] : memref<1x3x8x384xf32, #tpu.memory_space<vmem>>, vector<1x1x8x128xf32>
    %23 = vector.shape_cast %22 : vector<1x1x8x128xf32> to vector<8x128xf32>
    %24 = vector.shape_cast %21 : vector<8x128xf32> to vector<1x1x8x128xf32>
    tpu.vector_store %arg3[%c0_21, %c0_22, %c0_23, %c128], %24 {strides = array<i32>} : memref<1x3x8x384xf32, #tpu.memory_space<vmem>>, vector<1x1x8x128xf32>,
    %cst_24 = arith.constant -0.111111104 : f32
    %25 = vector.broadcast %cst_24 : f32 to vector<8x128xf32>
    %26 = arith.mulf %25, %20 : vector<8x128xf32>
    %cst_25 = arith.constant 1.000000e+00 : f32
    %27 = vector.broadcast %cst_25 : f32 to vector<8x128xf32>
    %28 = arith.addf %26, %27 : vector<8x128xf32>
    %c0_26 = arith.constant 0 : index
    %c1_27 = arith.constant 1 : index
    %c0_28 = arith.constant 0 : index
    %c128_29 = arith.constant 128 : index
    %29 = vector.load %arg3[%c0_26, %c1_27, %c0_28, %c128_29] : memref<1x3x8x384xf32, #tpu.memory_space<vmem>>, vector<1x1x8x128xf32>
    %30 = vector.shape_cast %29 : vector<1x1x8x128xf32> to vector<8x128xf32>
    %31 = vector.shape_cast %28 : vector<8x128xf32> to vector<1x1x8x128xf32>
    tpu.vector_store %arg3[%c0_26, %c1_27, %c0_28, %c128_29], %31 {strides = array<i32>} : memref<1x3x8x384xf32, #tpu.memory_space<vmem>>, vector<1x1x8x128xf32>,
    %cst_30 = arith.constant 0.111111112 : f32
    %32 = vector.broadcast %cst_30 : f32 to vector<8x128xf32>
    %33 = arith.mulf %32, %20 : vector<8x128xf32>
    %c0_31 = arith.constant 0 : index
    %c2_32 = arith.constant 2 : index
    %c0_33 = arith.constant 0 : index
    %c128_34 = arith.constant 128 : index
    %34 = vector.load %arg3[%c0_31, %c2_32, %c0_33, %c128_34] : memref<1x3x8x384xf32, #tpu.memory_space<vmem>>, vector<1x1x8x128xf32>
    %35 = vector.shape_cast %34 : vector<1x1x8x128xf32> to vector<8x128xf32>
    %36 = vector.shape_cast %33 : vector<8x128xf32> to vector<1x1x8x128xf32>
    tpu.vector_store %arg3[%c0_31, %c2_32, %c0_33, %c128_34], %36 {strides = array<i32>} : memref<1x3x8x384xf32, #tpu.memory_space<vmem>>, vector<1x1x8x128xf32>,
    %c0_35 = arith.constant 0 : index
    %c2_36 = arith.constant 2 : index
    %c0_37 = arith.constant 0 : index
    %c0_38 = arith.constant 0 : index
    %37 = vector.load %arg2[%c0_35, %c2_36, %c0_37, %c0_38] : memref<1x3x8x128xf32, #tpu.memory_space<vmem>>, vector<1x1x8x128xf32>
    %38 = vector.shape_cast %37 : vector<1x1x8x128xf32> to vector<8x128xf32>
    %cst_39 = arith.constant 1.000000e+00 : f32
    %39 = vector.broadcast %cst_39 : f32 to vector<8x128xf32>
    %40 = arith.subf %39, %38 : vector<8x128xf32>
    %cst_40 = arith.constant 9.000000e+00 : f32
    %41 = vector.broadcast %cst_40 : f32 to vector<8x128xf32>
    %42 = arith.mulf %40, %41 : vector<8x128xf32>
    %cst_41 = arith.constant 0.000000e+00 : f32
    %cst_42 = arith.constant 9.000000e+00 : f32
    %43 = vector.broadcast %cst_41 : f32 to vector<8x128xf32>
    %44 = arith.maximumf %43, %42 : vector<8x128xf32>
    %45 = vector.broadcast %cst_42 : f32 to vector<8x128xf32>
    %46 = arith.minimumf %45, %44 : vector<8x128xf32>
    %cst_43 = arith.constant 0.111111112 : f32
    %47 = vector.broadcast %cst_43 : f32 to vector<8x128xf32>
    %48 = arith.mulf %47, %46 : vector<8x128xf32>
    %c0_44 = arith.constant 0 : index
    %c0_45 = arith.constant 0 : index
    %c0_46 = arith.constant 0 : index
    %c256 = arith.constant 256 : index
    %49 = vector.load %arg3[%c0_44, %c0_45, %c0_46, %c256] : memref<1x3x8x384xf32, #tpu.memory_space<vmem>>, vector<1x1x8x128xf32>
    %50 = vector.shape_cast %49 : vector<1x1x8x128xf32> to vector<8x128xf32>
    %51 = vector.shape_cast %48 : vector<8x128xf32> to vector<1x1x8x128xf32>
    tpu.vector_store %arg3[%c0_44, %c0_45, %c0_46, %c256], %51 {strides = array<i32>} : memref<1x3x8x384xf32, #tpu.memory_space<vmem>>, vector<1x1x8x128xf32>,
    %cst_47 = arith.constant -0.111111104 : f32
    %52 = vector.broadcast %cst_47 : f32 to vector<8x128xf32>
    %53 = arith.mulf %52, %46 : vector<8x128xf32>
    %cst_48 = arith.constant 1.000000e+00 : f32
    %54 = vector.broadcast %cst_48 : f32 to vector<8x128xf32>
    %55 = arith.addf %53, %54 : vector<8x128xf32>
    %c0_49 = arith.constant 0 : index
    %c1_50 = arith.constant 1 : index
    %c0_51 = arith.constant 0 : index
    %c256_52 = arith.constant 256 : index
    %56 = vector.load %arg3[%c0_49, %c1_50, %c0_51, %c256_52] : memref<1x3x8x384xf32, #tpu.memory_space<vmem>>, vector<1x1x8x128xf32>
    %57 = vector.shape_cast %56 : vector<1x1x8x128xf32> to vector<8x128xf32>
    %58 = vector.shape_cast %55 : vector<8x128xf32> to vector<1x1x8x128xf32>
    tpu.vector_store %arg3[%c0_49, %c1_50, %c0_51, %c256_52], %58 {strides = array<i32>} : memref<1x3x8x384xf32, #tpu.memory_space<vmem>>, vector<1x1x8x128xf32>,
    %cst_53 = arith.constant 0.000000e+00 : f32
    %59 = vector.broadcast %cst_53 : f32 to vector<8x128xf32>
    %c0_54 = arith.constant 0 : index
    %c2_55 = arith.constant 2 : index
    %c0_56 = arith.constant 0 : index
    %c256_57 = arith.constant 256 : index
    %60 = vector.load %arg3[%c0_54, %c2_55, %c0_56, %c256_57] : memref<1x3x8x384xf32, #tpu.memory_space<vmem>>, vector<1x1x8x128xf32>
    %61 = vector.shape_cast %60 : vector<1x1x8x128xf32> to vector<8x128xf32>
    %62 = vector.shape_cast %59 : vector<8x128xf32> to vector<1x1x8x128xf32>
    tpu.vector_store %arg3[%c0_54, %c2_55, %c0_56, %c256_57], %62 {strides = array<i32>} : memref<1x3x8x384xf32, #tpu.memory_space<vmem>>, vector<1x1x8x128xf32>,
    return
  }
  func.func @transform_0(%arg0: i32, %arg1: i32) -> (i32, i32, i32, i32) {
    %c0_i32 = arith.constant 0 : i32
    %c0_i32_0 = arith.constant 0 : i32
    %c0_i32_1 = arith.constant 0 : i32
    return %arg0, %c0_i32, %arg1, %c0_i32_0 : i32, i32, i32, i32
  }
  func.func @transform_1(%arg0: i32, %arg1: i32) -> (i32, i32, i32, i32) {
    %c0_i32 = arith.constant 0 : i32
    %c0_i32_0 = arith.constant 0 : i32
    %c0_i32_1 = arith.constant 0 : i32
    return %arg0, %c0_i32, %arg1, %c0_i32_0 : i32, i32, i32, i32
  }
}

</mosaic_0001>

<bundles_post_ra>
// kernel: tpu_custom_call.1
= control target key start
LH: loop header
LB: loop body
LE: loop exit
PB: predicated region body
PF: predicated region fallthrough
CT: control target
= control target key end

     0   :  { %6 = vsyncpa [#allocation3], 0  ;;  %s719_s0 = inlined_call_operand.hbm [shape: f32[2,3,16,128], index: 0, kind: input, shape index: {}]   ;;  %s720_s1 = inlined_call_operand.hbm [shape: f32[2,3,16,384], index: 1, kind: output, shape index: {}]  }
   0x1   :  { %8 = vsyncpa [#allocation3 + $0x1], 0 }
   0x2   :  { %9 = vsyncpa [#allocation4], 0 }
   0x3   :  { %11 = vsyncpa [#allocation4 + $0x1], 0  ;;  %s540_s6 = smov 0   ;;  %s542_s7 = smov 0  }
   0x4   :  { %s544_s8 = smov 0   ;;  %s546_s9 = smov 0  }
   0x5   :  { %s548_s10 = smov 0   ;;  %s550_s11 = smov 0  }
   0x6   :  { %s552_s12 = smov 0   ;;  %s554_s13 = smov 0  }
   0x7 LB: > { %s287_s14 = sadd.s32 4294967295, %s519_s13   ;;  %s288_s15 = sadd.s32 4294967294, %s519_s13   ;;  %s519_s13 = sphi %s554_s13, %s17_s13   ;;  %s515_s12 = sphi %s552_s12, %s735_s12   ;;  %s511_s11 = sphi %s550_s11, %s734_s11   ;;  %s507_s10 = sphi %s548_s10, %s733_s10   ;;  %s503_s9 = sphi %s546_s9, %s732_s9   ;;  %s499_s8 = sphi %s544_s8, %s731_s8   ;;  %s495_s7 = sphi %s542_s7, %s730_s7   ;;  %s491_s6 = sphi %s540_s6, %s729_s6  }
   0x8   : > { %s26_s16 = sadd.s32 1, %s511_s11  ;;  %s29_s17 = sadd.s32 1, %s515_s12 }
   0x9   : > { %p27_p0 = scmp.ge.s32.totalorder %s26_s16, 2  ;;  %s38_s18 = sadd.s32 1, %s499_s8 }
   0xa   : > { %p45_p1 = scmp.ne.s32.totalorder %s499_s8, %s495_s7  ;;  %p46_p2 = scmp.eq.s32.totalorder %s519_s13, 0 }
   0xb   : > { %s737_s16 = smov (%p27_p0, %s26_s16), 0  ;;  %s739_s17 = smov (!%p27_p0, %s29_s17), %s515_s12 }
   0xc   : > { %s34_s19 = ssub.s32 %s511_s11, %s737_s16  ;;  %p593_p3 = por %p46_p2, %p45_p1 }
   0xd   : > { %p31_p4 = scmp.ge.s32.totalorder %s739_s17, 2  ;;  %p51_p5 = scmp.ne.s32.totalorder %s495_s7, %s491_s6 }
   0xe   : > { %p52_p6 = scmp.eq.s32.totalorder %s287_s14, 0  ;;  %p77_p7 = scmp.eq.s32.totalorder %s287_s14, 3 }
   0xf   : > { %s741_s17 = smov (%p31_p4, %s739_s17), 0  ;;  %p83_p10 = scmp.eq.s32.totalorder %s288_s15, 3 }
  0x10   : > { %723 = sst [smem:[#allocation8_spill]] %s741_s17  ;;  %p601_p8 = por %p52_p6, %p51_p5 }
  0x11   : > { %p605_p9 = por %p77_p7, %p45_p1  ;;  %s33_s23 = ssub.s32 %s515_s12, %s741_s17 }
  0x12   : > { %s35_s24 = sor.u32 %s34_s19, %s33_s23  ;;  %p611_p12 = por %p83_p10, %p51_p5 }
  0x13   : > { %p36_p11 = scmp.eq.s32.totalorder %s35_s24, 0  ;;  %p322_p13 = scmp.lt.s32.totalorder %s519_s13, 4 }
  0x14   : > { %s103_s26 = sand.u32 1, %s499_s8   ;;  %s305_s29 = smul.u32 6, %s515_s12 }
  0x15   : > { %s618_s27 = scalar_select %p36_p11, %s499_s8, %s38_s18  }
  0x16   : > { %s304_s28 = smul.u32 24, %s103_s26  ;;  %p623_p0 = pnand %p322_p13, %p593_p3 }
  0x17   : > { %s112_s2 = sadd.s32 %s511_s11, %s305_s29  ;;  %s104_s23 = scalar_lea.sflag [#allocation3], %s103_s26 }
  0x18   : > { %s107_s3 = scalar_lea.vmem [#allocation2], %s304_s28  ;;  %s291_s5 = sshll.u32 %s112_s2, 7 }
  0x19   : > { %s115_s4 = sshll.u32 %s107_s3, 4  ;;  %s114_s19 = scalar_lea.hbm %s719_s0, %s291_s5  ;;  %s116_s4 = int_to_ptr.vmem [resolvable:$true] %s115_s4 }
  0x1a   : > { %p397_p1 = pneg %p623_p0  ;;  %s408_s18 = scalar_lea.vmem %s116_s4, 384 }
  0x1b   : > { %p409_p2 = scmp.ne.s32.totalorder %s116_s4, %s408_s18  ;;  %s521_s20 = smov [#allocation2]  }
  0x1c   : > { %s413_s24 = sshll.u32 %s521_s20, 4  ;;  %s414_s24 = int_to_ptr.vmem [resolvable:$false] %s413_s24 }
  0x1d   : > { %p411_p4 = pnand %p409_p2, %p397_p1  ;;  %s415_s17 = scalar_lea.vmem %s414_s24, 768 }
  0x1e   : > { %p416_p5 = scmp.lt.s32.totalorder %s116_s4, %s414_s24  ;;  %p417_p6 = scmp.lt.s32.totalorder %s415_s17, %s408_s18 }
  0x1f   : > { %p412_p3 = pneg %p411_p4 }
  0x20   : > { %p418_p7 = por %p417_p6, %p416_p5 }
  0x22   : > { %p419_p10 = pnand %p418_p7, %p412_p3 }
  0x24   : > { %422 = shalt.err (!%p419_p10)
}
  0x25   : > { %s522_s28 = smov 256   ;;  %s523_s26 = smov 128  }
  0x26   : > { %s524_s29 = smov 8   ;;  %p292_p11 = scmp.ge.s32.totalorder %s519_s13, 1 }
  0x27   : > { %317 = dma.hbm_to_vmem [thread:$0]  (!%p623_p0), %s114_s19, 384, %s116_s4, %s104_s23, %s522_s28, %s523_s26, %s524_s29  }
  0x28   : > { %p123_p13 = scmp.lt.s32.totalorder %s519_s13, 5 }
  0x2a   : > { %p124_p1 = pnand %p292_p11, %p123_p13 }
  0x2b   : > { %s638_s2 = sand.u32 (!%p124_p1), 1, %s495_s7  }
  0x2c   : > { %127 = sbr.rel (%p124_p1) target bundleno = 79 (0x4f), region = 24  ;;  %s130_s3 = scalar_lea.sflag (!%p124_p1), [#allocation3], %s638_s2 }
  0x2d   : > { %s306_s17 = smul.u32 (!%p124_p1), 24, %s638_s2 }
  0x2f   : > { %s133_s5 = scalar_lea.vmem (!%p124_p1), [#allocation2], %s306_s17 }
  0x31   : > { %482 = dma.done.wait (%p601_p8), %s130_s3, 384  }
  0x32   : > { %484 = vsyncadd (%p601_p8), %s130_s3, 4294966912  ;;  %s307_s30 = smul.u32 72, %s638_s2  ;;  %v525_v0 = vmov 0.0   ;;  %v152_v1 = vld [vmem:[%s133_s5] sm:$0xff]  ;;  %v295_v2 = vld [vmem:[%s133_s5 + $0x8] sm:$0xff]  ;;  %s183_s20 = scalar_lea.sflag [#allocation4], %s638_s2 }
  0x33   : > { %v298_v3 = vld [vmem:[%s133_s5 + $0x10] sm:$0xff]  ;;  %s308_s21 = smul.u32 3, %s503_s9  ;;  %v160_v4 = vsub.f32 1.0, %v295_v2  ;;  %s526_s28 = smov [#allocation5]  }
  0x34   : > { %s647_s4 = scalar_lea.vmem [#allocation5], %s307_s30  ;;  %v172_v5 = vsub.f32 1.0, %v298_v3  ;;  %s309_s14 = smul.u32 18, %s507_s10 }
  0x35   : > { %164 = vst [vmem:[%s647_s4 + $0x8] sm:$0xff] %v525_v0  ;;  %300 = vst [vmem:[%s647_s4 + $0x40] sm:$0xff] %v525_v0  ;;  %v161_v6 = vmul.f32 9.0, %v160_v4  ;;  %s198_s19 = sshll.u32 %s647_s4, 4  ;;  %s427_s26 = sshll.u32 %s526_s28, 4  ;;  %s657_s19 = int_to_ptr.vmem [resolvable:$true] %s198_s19  ;;  %s428_s26 = int_to_ptr.vmem [resolvable:$false] %s427_s26 }
  0x36   : > { %153 = vst [vmem:[%s647_s4] sm:$0xff] %v152_v1  ;;  %293 = vst [vmem:[%s647_s4 + $0x18] sm:$0xff] %v152_v1  ;;  %v173_v7 = vmul.f32 9.0, %v172_v5  ;;  %s195_s15 = sadd.s32 %s309_s14, %s308_s21  ;;  %s423_s24 = scalar_lea.vmem %s657_s19, 1152 }
  0x37   : > { %294 = vst [vmem:[%s647_s4 + $0x30] sm:$0xff] %v152_v1  ;;  %v162_v8 = vmax.f32 %v161_v6, 0.0  ;;  %s301_s9 = sshll.u32 %s195_s15, 7  ;;  %p424_p8 = scmp.ne.s32.totalorder %s657_s19, %s423_s24 }
  0x38   : > { %v174_v9 = vmax.f32 %v173_v7, 0.0  ;;  %s664_s18 = scalar_lea.hbm %s720_s1, %s301_s9  ;;  %s429_s29 = scalar_lea.vmem %s428_s26, 2304 }
  0x39   : > { %v163_v10 = vmin.f32 %v162_v8, 9.0  ;;  %p425_p0 = pnand %p424_p8, %p605_p9  ;;  %p430_p4 = scmp.lt.s32.totalorder %s657_s19, %s428_s26 }
  0x3a   : > { %v175_v11 = vmin.f32 %v174_v9, 9.0  ;;  %p431_p3 = scmp.lt.s32.totalorder %s429_s29, %s423_s24 }
  0x3b   : > { %v165_v12 = vmul.f32 -0.111111104, %v163_v10  ;;  %v168_v13 = vmul.f32 0.11111111, %v163_v10  ;;  %p426_p2 = pneg %p425_p0 }
  0x3c   : > { %v176_v14 = vmul.f32 0.11111111, %v175_v11  ;;  %v178_v15 = vmul.f32 -0.111111104, %v175_v11  ;;  %p432_p5 = por %p431_p3, %p430_p4 }
  0x3d   : > { %v166_v16 = vadd.f32 1.0, %v165_v12  ;;  %297 = vst [vmem:[%s647_s4 + $0x38] sm:$0xff] %v168_v13 }
  0x3e   : > { %177 = vst [vmem:[%s647_s4 + $0x10] sm:$0xff] %v176_v14  ;;  %v179_v17 = vadd.f32 1.0, %v178_v15  ;;  %p433_p6 = pnand %p432_p5, %p426_p2 }
  0x3f   : > { %296 = vst [vmem:[%s647_s4 + $0x20] sm:$0xff] %v166_v16 }
  0x40   : > { %299 = vst [vmem:[%s647_s4 + $0x28] sm:$0xff] %v179_v17 }
  0x41   : > { %436 = shalt.err (!%p433_p6)
}
  0x42   : > { %s437_s17 = scalar_lea.hbm %s664_s18, 1152  ;;  %s441_s30 = scalar_lea.hbm %s720_s1, 4608 }
  0x43   : > { %p438_p7 = scmp.ne.s32.totalorder %s664_s18, %s437_s17  ;;  %p442_p13 = scmp.lt.s32.totalorder %s664_s18, %s720_s1 }
  0x44   : > { %p443_p1 = scmp.lt.s32.totalorder %s441_s30, %s437_s17 }
  0x45   : > { %p439_p10 = pnand %p438_p7, %p605_p9 }
  0x46   : > { %p444_p8 = por %p443_p1, %p442_p13 }
  0x47   : > { %p440_p11 = pneg %p439_p10 }
  0x49   : > { %p445_p0 = pnand %p444_p8, %p440_p11 }
  0x4b   : > { %448 = shalt.err (!%p445_p0)
}
  0x4c   : > { %s527_s14 = smov 384   ;;  %s528_s15 = smov 768  }
  0x4d   : > { %s529_s9 = smov 24  }
  0x4e   : > { %312 = dma.vmem_to_hbm [thread:$0]  (%p605_p9), %s657_s19, 1152, %s664_s18, %s183_s20, %s527_s14, %s528_s15, %s529_s9  }
  0x4f PF: > { %p323_p2 = scmp.ge.s32.totalorder %s519_s13, 2  ;;  %s213_s10 = sand.u32 1, %s491_s6  }
  0x50   : > { %s214_s23 = scalar_lea.sflag [#allocation4], %s213_s10 }
  0x51   : > { %p319_p4 = pnand %p323_p2, %p611_p12 }
  0x53   : > { %p320_p3 = pneg %p319_p4 }
  0x55   : > { %486 = dma.done.wait (%p320_p3), %s214_s23, 1152  }
  0x56   : > { %488 = vsyncadd (%p320_p3), %s214_s23, 4294966144  ;;  %s17_s13 = sadd.s32 1, %s519_s13   ;;  %s728_s22 = sld [smem:[#allocation8_spill]] }
  0x57   : > { %p14_p5 = scmp.ge.s32.totalorder %s17_s13, 6   ;;  %s729_s6 = smov %s495_s7 }
  0x58   : > { %s730_s7 = smov %s499_s8  ;;  %s731_s8 = smov %s618_s27 }
  0x59   : > { %s732_s9 = smov %s511_s11  ;;  %s733_s10 = smov %s515_s12 }
  0x5a   : > { %s734_s11 = smov %s737_s16  ;;  %16 = sbr.rel (!%p14_p5) target bundleno = 7 (0x7), region = 73 }
  0x5c   : > { %s735_s12 = smov %s728_s22 }
  0x5f   :  { %219 = vsyncpa [#allocation3], 1 }
  0x60   :  { %221 = vsyncpa [#allocation3 + $0x1], 1 }
  0x61   :  { %222 = vsyncpa [#allocation4], 1 }
  0x62   :  { %224 = vsyncpa [#allocation4 + $0x1], 1 }

</bundles_post_ra>
